<compile_context>
chip_gen: v7x
topology: tpu7x:2x2x1
jax: 0.10.0
libtpu: 0.0.40
codegen_flags: <defaults>
</compile_context>

<pallas_src>
import jax
import jax.numpy as jnp
import numpy as np
from jax.experimental import pallas as pl
from jax.experimental.pallas import tpu as pltpu

_LANES = 256            # lane-dense last dim (multiple of 128 -> unmasked vld/vst)
_MAX_BLOCK_ROWS = 2048  # 2 MiB per f32 operand per buffer; 3 ops x 2 bufs ~= 12 MiB


def _residual_kernel(yh_ref, y_ref, g_ref):
    # gradient of 1/2 * ||y_hat - y||^2 w.r.t. y_hat  ==  y_hat - y
    g_ref[...] = yh_ref[...] - y_ref[...]


def _sublane_multiple(dtype):
    # f32/f64 -> 8 rows per vreg tile, bf16/f16 -> 16, 8-bit -> 32.
    itemsize = np.dtype(dtype).itemsize
    return 8 * max(1, 4 // itemsize)


@jax.jit
def motif_data_consistency(y_hat, y):
    """Forward of MOTIF_DataConsistency: returns d(1/2||y_hat-y||^2)/d(y_hat)."""
    assert y_hat.shape == y.shape, "y_hat / y shape mismatch"
    dtype = jnp.result_type(y_hat, y)      # explicit promotion (no silent drop)
    y_hat = y_hat.astype(dtype)
    y = y.astype(dtype)
    shape = y_hat.shape
    is_complex = jnp.issubdtype(dtype, jnp.complexfloating)

    if is_complex:
        work_dtype = jnp.finfo(dtype).dtype          # complex64 -> float32
        def pack(z):
            # interleaved [re, im] pairs; matches complex memory layout.
            return jnp.stack([jnp.real(z), jnp.imag(z)], axis=-1).reshape(-1)
    else:
        work_dtype = dtype                           # keep native width
        def pack(z):
            return z.reshape(-1)                     # free (layout-only)

    a = pack(y_hat)
    b = pack(y)
    n = a.shape[0]

    sub = _sublane_multiple(work_dtype)
    chunk = sub * _LANES
    n_pad = -(-n // chunk) * chunk                   # minimal tile-aligned length
    padded = n_pad != n
    if padded:
        # Small tail pad only (skipped for the common aligned sizes).
        a = jnp.pad(a, (0, n_pad - n))
        b = jnp.pad(b, (0, n_pad - n))

    rows = n_pad // _LANES                           # multiple of `sub`
    block_rows = min(rows, _MAX_BLOCK_ROWS)          # multiple of `sub` as well
    num_blocks = pl.cdiv(rows, block_rows)           # partial last block is OK

    a2 = a.reshape(rows, _LANES)
    b2 = b.reshape(rows, _LANES)

    out = pl.pallas_call(
        _residual_kernel,
        out_shape=jax.ShapeDtypeStruct((rows, _LANES), work_dtype),
        grid=(num_blocks,),
        in_specs=[
            pl.BlockSpec((block_rows, _LANES), lambda i: (i, 0)),
            pl.BlockSpec((block_rows, _LANES), lambda i: (i, 0)),
        ],
        out_specs=pl.BlockSpec((block_rows, _LANES), lambda i: (i, 0)),
        compiler_params=pltpu.CompilerParams(
            dimension_semantics=("parallel",),
            vmem_limit_bytes=32 * 1024 * 1024,
        ),
    )(a2, b2)

    flat = out.reshape(-1)                           # free (layout-only)
    if padded:
        flat = flat[:n]                              # single slice, only if padded
    if is_complex:
        pairs = flat.reshape(shape + (2,))
        return jax.lax.complex(pairs[..., 0], pairs[..., 1]).astype(dtype)
    return flat.reshape(shape)


if __name__ == "__main__":
    key = jax.random.PRNGKey(0)
    k1, k2, k3, k4, k5, k6, k7, k8 = jax.random.split(key, 8)

    # --- complex64 k-space-like inputs (typical for MOTIF data consistency) ---
    shape_c = (2, 4, 16, 16)
    y_hat = jax.lax.complex(jax.random.normal(k1, shape_c, jnp.float32),
                            jax.random.normal(k2, shape_c, jnp.float32))
    y = jax.lax.complex(jax.random.normal(k3, shape_c, jnp.float32),
                        jax.random.normal(k4, shape_c, jnp.float32))
    grad = jax.block_until_ready(motif_data_consistency(y_hat, y))
    ref = y_hat - y
    np.testing.assert_allclose(np.asarray(jnp.real(grad)), np.asarray(jnp.real(ref)),
                               rtol=1e-6, atol=1e-6)
    np.testing.assert_allclose(np.asarray(jnp.imag(grad)), np.asarray(jnp.imag(ref)),
                               rtol=1e-6, atol=1e-6)

    # --- real float32, ragged shape (exercises the minimal tail-pad path) ---
    shape_r = (3, 5, 7, 9)
    xr = jax.random.normal(k5, shape_r, jnp.float32)
    yr = jax.random.normal(k6, shape_r, jnp.float32)
    grad_r = jax.block_until_ready(motif_data_consistency(xr, yr))
    np.testing.assert_allclose(np.asarray(grad_r), np.asarray(xr - yr),
                               rtol=1e-6, atol=1e-6)

    # --- bf16 native-width path (no f32 upcast; sublane multiple = 16) ---
    xb = jax.random.normal(k7, shape_c, jnp.bfloat16)
    yb = jax.random.normal(k8, shape_c, jnp.bfloat16)
    grad_b = jax.block_until_ready(motif_data_consistency(xb, yb))
    assert grad_b.dtype == jnp.bfloat16
    np.testing.assert_allclose(np.asarray(grad_b, dtype=np.float32),
                               np.asarray(xb - yb, dtype=np.float32),
                               rtol=1e-2, atol=1e-2)

    print("KERNEL_OK")
</pallas_src>

<mosaic_0001>
module attributes {stable_mosaic.version = 11 : i64} {
  func.func @_residual_kernel(%arg0: i32, %arg1: memref<16x256xf32, #tpu.memory_space<vmem>>, %arg2: memref<16x256xf32, #tpu.memory_space<vmem>>, %arg3: memref<16x256xf32, #tpu.memory_space<vmem>>) attributes {dimension_semantics = [#tpu.dimension_semantics<parallel>], iteration_bounds = array<i64: 1>, scalar_prefetch = 0 : i64, scratch_operands = 0 : i64, tpu.core_type = #tpu.core_type<tc>, window_params = [{transform_indices = @transform_0, window_bounds = array<i64: 16, 256>}, {transform_indices = @transform_1, window_bounds = array<i64: 16, 256>}, {transform_indices = @transform_2, window_bounds = array<i64: 16, 256>}]} {
    %c0 = arith.constant 0 : index
    %c0_0 = arith.constant 0 : index
    %0 = vector.load %arg1[%c0, %c0_0] : memref<16x256xf32, #tpu.memory_space<vmem>>, vector<16x256xf32>
    %c0_1 = arith.constant 0 : index
    %c0_2 = arith.constant 0 : index
    %1 = vector.load %arg2[%c0_1, %c0_2] : memref<16x256xf32, #tpu.memory_space<vmem>>, vector<16x256xf32>
    %2 = arith.subf %0, %1 : vector<16x256xf32>
    %c0_3 = arith.constant 0 : index
    %c0_4 = arith.constant 0 : index
    %3 = vector.load %arg3[%c0_3, %c0_4] : memref<16x256xf32, #tpu.memory_space<vmem>>, vector<16x256xf32>
    tpu.vector_store %arg3[%c0_3, %c0_4], %2 {strides = array<i32>} : memref<16x256xf32, #tpu.memory_space<vmem>>, vector<16x256xf32>,
    return
  }
  func.func @transform_0(%arg0: i32) -> (i32, i32) {
    %c0_i32 = arith.constant 0 : i32
    %c0_i32_0 = arith.constant 0 : i32
    return %arg0, %c0_i32 : i32, i32
  }
  func.func @transform_1(%arg0: i32) -> (i32, i32) {
    %c0_i32 = arith.constant 0 : i32
    %c0_i32_0 = arith.constant 0 : i32
    return %arg0, %c0_i32 : i32, i32
  }
  func.func @transform_2(%arg0: i32) -> (i32, i32) {
    %c0_i32 = arith.constant 0 : i32
    %c0_i32_0 = arith.constant 0 : i32
    return %arg0, %c0_i32 : i32, i32
  }
}

</mosaic_0001>

<bundles_post_ra>
// kernel: custom-call.1
= control target key start
LH: loop header
LB: loop body
LE: loop exit
PB: predicated region body
PF: predicated region fallthrough
CT: control target
= control target key end

     0   :  { %s59_s0 = inlined_call_operand.hbm [shape: c64[2,4,16,16], index: 0, kind: input, shape index: {}]   ;;  %s60_s1 = inlined_call_operand.vmem [shape: f32[2,4,16,16], index: 1, kind: output, shape index: {}]  }
   0x1   :  { %s2_s8 = scalar_lea.hbm %s59_s0, 2048 }
   0x2   :  { %3 = vsyncpa [#allocation0], 0  ;;  %s4_s11 = sshll.u32 %s60_s1, 4  ;;  %s34_s14 = scalar_lea.hbm %s59_s0, 4096  ;;  %s5_s11 = int_to_ptr.vmem [resolvable:$true] %s4_s11 }
   0x3   :  { %p11_p0 = scmp.ne.s32.totalorder %s2_s8, %s34_s14  ;;  %p13_p1 = scmp.lt.u32.totalorder %s2_s8, %s59_s0 }
   0x4   :  { %p14_p2 = scmp.lt.u32.totalorder %s34_s14, %s34_s14  ;;  %p16_p4 = scmp.lt.u32.totalorder %s34_s14, %s2_s8 }
   0x6   :  { %p15_p3 = por %p14_p2, %p13_p1 }
   0x8   :  { %p17_p5 = por %p16_p4, %p15_p3 }
   0xa   :  { %p18_p6 = pnand %p17_p5, %p11_p0 }
   0xc   :  { %21 = shalt.err (!%p18_p6)  }
   0xd   :  { %s22_s17 = scalar_lea.vmem %s5_s11, 2048  ;;  %p27_p8 = scmp.lt.s32.totalorder %s5_s11, %s5_s11 }
   0xe   :  { %p23_p7 = scmp.ne.s32.totalorder %s5_s11, %s22_s17  ;;  %p28_p9 = scmp.lt.s32.totalorder %s22_s17, %s22_s17 }
  0x10   :  { %p29_p10 = por %p28_p9, %p27_p8 }
  0x12   :  { %p30_p11 = pnand %p29_p10, %p23_p7 }
  0x14   :  { %33 = shalt.err (!%p30_p11)  }
  0x15   :  { %7 = dma.hbm_to_vmem [thread:$0]  %s2_s8, 2048, %s5_s11, [#allocation0] }
  0x16   :  { %35 = dma.done.wait [#allocation0], 2048  }
  0x17   :  { %36 = vsyncadd [#allocation0], 4294965248 }
  0x18   :  { %9 = vsyncpa [#allocation0], 1 }

// kernel: custom-call
= control target key start
LH: loop header
LB: loop body
LE: loop exit
PB: predicated region body
PF: predicated region fallthrough
CT: control target
= control target key end

     0   :  { %2 = vsyncpa [#allocation0], 0  ;;  %s61_s0 = inlined_call_operand.hbm [shape: c64[2,4,16,16], index: 0, kind: input, shape index: {}]   ;;  %s62_s1 = inlined_call_operand.vmem [shape: f32[2,4,16,16], index: 1, kind: output, shape index: {}]  }
   0x1   :  { %s3_s8 = sshll.u32 %s62_s1, 4  ;;  %s9_s11 = scalar_lea.hbm %s61_s0, 2048  ;;  %s4_s8 = int_to_ptr.vmem [resolvable:$true] %s3_s8 }
   0x2   :  { %p10_p0 = scmp.ne.s32.totalorder %s61_s0, %s9_s11  ;;  %s11_s16 = scalar_lea.hbm %s61_s0, 4096 }
   0x3   :  { %p12_p1 = scmp.lt.u32.totalorder %s11_s16, %s9_s11  ;;  %p13_p2 = scmp.lt.u32.totalorder %s9_s11, %s61_s0 }
   0x5   :  { %p14_p3 = por %p13_p2, %p12_p1 }
   0x7   :  { %p15_p4 = pnand %p14_p3, %p10_p0 }
   0x9   :  { %18 = shalt.err (!%p15_p4)  }
   0xa   :  { %s19_s1 = scalar_lea.vmem %s4_s8, 2048  ;;  %p24_p6 = scmp.lt.s32.totalorder %s4_s8, %s4_s8 }
   0xb   :  { %p20_p5 = scmp.ne.s32.totalorder %s4_s8, %s19_s1  ;;  %p25_p7 = scmp.lt.s32.totalorder %s19_s1, %s19_s1 }
   0xd   :  { %p26_p8 = por %p25_p7, %p24_p6 }
   0xf   :  { %p27_p9 = pnand %p26_p8, %p20_p5 }
  0x11   :  { %30 = shalt.err (!%p27_p9)  }
  0x12   :  { %6 = dma.hbm_to_vmem [thread:$0]  %s61_s0, 2048, %s4_s8, [#allocation0] }
  0x13   :  { %31 = dma.done.wait [#allocation0], 2048  }
  0x14   :  { %32 = vsyncadd [#allocation0], 4294965248 }
  0x15   :  { %8 = vsyncpa [#allocation0], 1 }

// kernel: motif_data_consistency.1
= control target key start
LH: loop header
LB: loop body
LE: loop exit
PB: predicated region body
PF: predicated region fallthrough
CT: control target
= control target key end

     0   :  { %s82_s0 = inlined_call_operand.vmem [shape: f32[16,256], index: 0, kind: input, shape index: {}]   ;;  %s83_s1 = inlined_call_operand.vmem [shape: f32[16,256], index: 1, kind: input, shape index: {}]   ;;  %s84_s2 = inlined_call_operand.vmem [shape: f32[16,256], index: 2, kind: output, shape index: {}]  }
   0x1   :  { %v11_v0 = vld [vmem:[%s82_s0] sm:$0xff]  ;;  %v12_v2 = vld [vmem:[%s82_s0 + $0x8] sm:$0xff]  ;;  %v13_v5 = vld [vmem:[%s82_s0 + $0x10] sm:$0xff] }
   0x2   :  { %v15_v1 = vld [vmem:[%s83_s1] sm:$0xff]  ;;  %v16_v4 = vld [vmem:[%s83_s1 + $0x8] sm:$0xff]  ;;  %v17_v6 = vld [vmem:[%s83_s1 + $0x10] sm:$0xff] }
   0x3   :  { %v19_v3 = vsub.f32 %v11_v0, %v15_v1  ;;  %v20_v7 = vsub.f32 %v12_v2, %v16_v4  ;;  %v21_v8 = vsub.f32 %v13_v5, %v17_v6  ;;  %v14_v9 = vld [vmem:[%s82_s0 + $0x18] sm:$0xff] }
   0x4   :  { %v18_v10 = vld [vmem:[%s83_s1 + $0x18] sm:$0xff] }
   0x5   :  { %23 = vst [vmem:[%s84_s2] sm:$0xff] %v19_v3  ;;  %v22_v11 = vsub.f32 %v14_v9, %v18_v10  ;;  %24 = vst [vmem:[%s84_s2 + $0x8] sm:$0xff] %v20_v7 }
   0x6   :  { %25 = vst [vmem:[%s84_s2 + $0x10] sm:$0xff] %v21_v8 }
   0x7   :  { %26 = vst [vmem:[%s84_s2 + $0x18] sm:$0xff] %v22_v11 }

// kernel: custom-call.4
= control target key start
LH: loop header
LB: loop body
LE: loop exit
PB: predicated region body
PF: predicated region fallthrough
CT: control target
= control target key end

     0   :  { %s126_s0 = inlined_call_operand.vmem [shape: f32[2,4,16,16], index: 0, kind: input, shape index: {}]   ;;  %s127_s1 = inlined_call_operand.vmem [shape: f32[2,4,16,16], index: 1, kind: input, shape index: {}]   ;;  %s128_s2 = inlined_call_operand.hbm [shape: c64[2,4,16,16], index: 2, kind: output, shape index: {}]  }
   0x1   :  { %s87_s11 = scalar_lea.hbm %s128_s2, 2048 }
   0x2   :  { %4 = vsyncpa [#allocation0], 0  ;;  %s5_s14 = sshll.u32 %s126_s0, 4  ;;  %s6_s14 = int_to_ptr.vmem [resolvable:$true] %s5_s14 }
   0x3   :  { %s18_s15 = scalar_lea.vmem %s6_s14, 2048  ;;  %p23_p1 = scmp.lt.s32.totalorder %s6_s14, %s6_s14 }
   0x4   :  { %p19_p0 = scmp.ne.s32.totalorder %s6_s14, %s18_s15  ;;  %p24_p2 = scmp.lt.s32.totalorder %s18_s15, %s18_s15 }
   0x6   :  { %p25_p3 = por %p24_p2, %p23_p1 }
   0x8   :  { %p26_p4 = pnand %p25_p3, %p19_p0 }
   0xa   :  { %29 = shalt.err (!%p26_p4)  }
   0xb   :  { %p31_p5 = scmp.ne.s32.totalorder %s128_s2, %s87_s11  ;;  %s32_s0 = scalar_lea.hbm %s128_s2, 4096 }
   0xc   :  { %p33_p6 = scmp.lt.u32.totalorder %s32_s0, %s87_s11  ;;  %p34_p7 = scmp.lt.u32.totalorder %s87_s11, %s128_s2 }
   0xe   :  { %p35_p8 = por %p34_p7, %p33_p6 }
  0x10   :  { %p36_p9 = pnand %p35_p8, %p31_p5 }
  0x12   :  { %39 = shalt.err (!%p36_p9)  }
  0x13   :  { %8 = dma.vmem_to_hbm [thread:$0]  %s6_s14, 2048, %s128_s2, [#allocation0] }
  0x14   :  { %65 = dma.done.wait [#allocation0], 2048  }
  0x15   :  { %66 = vsyncadd [#allocation0], 4294965248 }
  0x16   :  { %10 = vsyncpa [#allocation0], 1 }
  0x17   :  { %11 = vsyncpa [#allocation1], 0  ;;  %s12_s28 = sshll.u32 %s127_s1, 4  ;;  %s13_s28 = int_to_ptr.vmem [resolvable:$true] %s12_s28 }
  0x18   :  { %s40_s29 = scalar_lea.vmem %s13_s28, 2048  ;;  %p45_p11 = scmp.lt.s32.totalorder %s13_s28, %s13_s28 }
  0x19   :  { %p41_p10 = scmp.ne.s32.totalorder %s13_s28, %s40_s29  ;;  %p46_p12 = scmp.lt.s32.totalorder %s40_s29, %s40_s29 }
  0x1b   :  { %p47_p13 = por %p46_p12, %p45_p11 }
  0x1d   :  { %p48_p0 = pnand %p47_p13, %p41_p10 }
  0x1f   :  { %51 = shalt.err (!%p48_p0)  }
  0x20   :  { %p53_p1 = scmp.ne.s32.totalorder %s87_s11, %s32_s0  ;;  %p56_p2 = scmp.lt.u32.totalorder %s32_s0, %s32_s0 }
  0x22   :  { %p57_p3 = por %p56_p2, %p34_p7 }
  0x24   :  { %p59_p4 = por %p57_p3, %p33_p6 }
  0x26   :  { %p60_p5 = pnand %p59_p4, %p53_p1 }
  0x28   :  { %63 = shalt.err (!%p60_p5)  }
  0x29   :  { %15 = dma.vmem_to_hbm [thread:$0]  %s13_s28, 2048, %s87_s11, [#allocation1] }
  0x2a   :  { %67 = dma.done.wait [#allocation1], 2048  }
  0x2b   :  { %68 = vsyncadd [#allocation1], 4294965248 }
  0x2c   :  { %17 = vsyncpa [#allocation1], 1 }

</bundles_post_ra>
